<compile_context>
chip_gen: v6e
topology: v6e:2x2x1
jax: 0.10.0
libtpu: 0.0.40
codegen_flags: <defaults>
</compile_context>

<pallas_src>
import functools

import jax
import jax.numpy as jnp
from jax.experimental import pallas as pl
from jax.experimental.pallas import tpu as pltpu


def _round_up(x, m):
    return (x + m - 1) // m * m


def _bf16_activations_ok():
    """bf16 tanh only on generations with a bf16 VPU/EUP datapath (v6e/v7x)."""
    try:
        kind = jax.devices()[0].device_kind.lower()
    except Exception:
        return False
    return ("v6" in kind) or ("v7" in kind) or ("7x" in kind)


def emg_mlp_kernel(x_ref, w1_ref, w2_ref, w3_ref, w4_ref, o_ref, *, act_dtype):
    """Fused MLP: 3x (Linear + tanh) -> Linear -> softmax over the class axis.

    x_ref holds f32 (cast to bf16 in-kernel); weights are bf16; all matmul
    accumulation is f32. tanh runs in `act_dtype` (bf16 on v6e/v7x, f32 on v5e).
    """
    x = x_ref[...].astype(jnp.bfloat16)                      # (TILE_M, 36)

    h = jnp.dot(x, w1_ref[...], preferred_element_type=jnp.float32)
    h = jnp.tanh(h.astype(act_dtype))
    h = jnp.dot(h.astype(jnp.bfloat16), w2_ref[...],
                preferred_element_type=jnp.float32)
    h = jnp.tanh(h.astype(act_dtype))
    h = jnp.dot(h.astype(jnp.bfloat16), w3_ref[...],
                preferred_element_type=jnp.float32)
    h = jnp.tanh(h.astype(act_dtype))
    logits = jnp.dot(h.astype(jnp.bfloat16), w4_ref[...],
                     preferred_element_type=jnp.float32)     # (TILE_M, OUTPUT)

    # softmax along dim=1 (classes), f32 throughout; EXACT division so rows
    # sum to 1 to f32 precision (approx reciprocal was the previous failure).
    m = jnp.max(logits, axis=1, keepdims=True)
    e = jnp.exp(logits - m)
    denom = jnp.sum(e, axis=1, keepdims=True)
    o_ref[...] = e / denom


def shift_scale_cov_emg_net(x, w1, w2, w3, w4, *, tile_m=4096):
    """Wrapper mirroring ShiftScaleCovEMGNet.forward.

    x  : (B, ...) with prod(dims after batch) == 36
    w1 : (72, 36)  PyTorch layout (out, in), bias=False
    w2 : (72, 72)
    w3 : (36, 72)
    w4 : (OUTPUT, 36)
    """
    B = x.shape[0]
    x_flat = x.reshape(B, -1).astype(jnp.float32)   # torch.flatten(x, 1)
    feat = x_flat.shape[1]
    assert feat == 36, feat
    out_classes = w4.shape[0]

    # Batch tiling (no padding copy of x). If the tile equals the full batch it
    # is a legal full-extent block; otherwise it is a multiple of 8 sublanes and
    # Pallas masks the ragged last block.
    if B <= tile_m:
        tile_m_eff = B
    else:
        # >= 2 grid steps so a v7x megacore shards the batch across both TCs.
        tile_m_eff = min(tile_m, _round_up(pl.cdiv(B, 2), 8))
    grid = (pl.cdiv(B, tile_m_eff),)

    # Pre-transpose weights (glue, not hot path) so the kernel does x @ W_t.
    w1t = jnp.asarray(w1, jnp.bfloat16).T   # (36, 72)
    w2t = jnp.asarray(w2, jnp.bfloat16).T   # (72, 72)
    w3t = jnp.asarray(w3, jnp.bfloat16).T   # (72, 36)
    w4t = jnp.asarray(w4, jnp.bfloat16).T   # (36, OUTPUT)

    act_dtype = jnp.bfloat16 if _bf16_activations_ok() else jnp.float32

    # Weights: constant block index -> DMA'd once, resident in VMEM.
    def w_spec(shape):
        return pl.BlockSpec(shape, lambda i: (0, 0))

    flops = 2 * B * (36 * 72 + 72 * 72 + 72 * 36 + 36 * out_classes)
    transcendentals = B * (72 + 72 + 36 + out_classes)        # tanh + exp
    bytes_accessed = (B * (feat * 4 + out_classes * 4)
                      + 2 * (36 * 72 + 72 * 72 + 72 * 36 + 36 * out_classes))

    kernel = functools.partial(emg_mlp_kernel, act_dtype=act_dtype)

    out = pl.pallas_call(
        kernel,
        out_shape=jax.ShapeDtypeStruct((B, out_classes), jnp.float32),
        grid=grid,
        in_specs=[
            pl.BlockSpec((tile_m_eff, feat), lambda i: (i, 0)),   # x tile
            w_spec(w1t.shape),
            w_spec(w2t.shape),
            w_spec(w3t.shape),
            w_spec(w4t.shape),
        ],
        out_specs=pl.BlockSpec((tile_m_eff, out_classes), lambda i: (i, 0)),
        compiler_params=pltpu.CompilerParams(
            dimension_semantics=("parallel",),
            vmem_limit_bytes=32 * 1024 * 1024,
        ),
        cost_estimate=pl.CostEstimate(
            flops=flops,
            transcendentals=transcendentals,
            bytes_accessed=bytes_accessed,
        ),
    )(x_flat, w1t, w2t, w3t, w4t)

    # torch.squeeze(out)
    return jnp.squeeze(out)


def _ref_forward(x, w1, w2, w3, w4):
    """Pure-JAX f32 reference for correctness checking."""
    B = x.shape[0]
    h = x.reshape(B, -1).astype(jnp.float32)
    h = jnp.tanh(h @ w1.T)
    h = jnp.tanh(h @ w2.T)
    h = jnp.tanh(h @ w3.T)
    logits = h @ w4.T
    out = jax.nn.softmax(logits, axis=1)
    return jnp.squeeze(out)


if __name__ == "__main__":
    OUTPUT = 8          # number of classes
    B = 4               # batch
    # x flattens to 36 features per sample -> use (B, 6, 6)
    key = jax.random.PRNGKey(0)
    kx, k1, k2, k3, k4 = jax.random.split(key, 5)

    x = jax.random.normal(kx, (B, 6, 6), dtype=jnp.float32)

    # nn.Linear default init: U(-1/sqrt(fan_in), 1/sqrt(fan_in)), weight (out, in).
    def init_linear(k, out_f, in_f):
        bound = 1.0 / jnp.sqrt(jnp.float32(in_f))
        return jax.random.uniform(k, (out_f, in_f), jnp.float32, -bound, bound)

    w1 = init_linear(k1, 72, 36)
    w2 = init_linear(k2, 72, 72)
    w3 = init_linear(k3, 36, 72)
    w4 = init_linear(k4, OUTPUT, 36)

    out = shift_scale_cov_emg_net(x, w1, w2, w3, w4)
    out = jax.block_until_ready(out)

    ref = _ref_forward(x, w1, w2, w3, w4)
    assert out.shape == ref.shape, (out.shape, ref.shape)
    # bf16 matmul operands -> loosened tolerance vs the f32 reference.
    assert jnp.allclose(out, ref, atol=2e-2, rtol=2e-2), "mismatch vs reference"
    # exact softmax division -> rows sum to 1 at f32 precision.
    assert jnp.allclose(jnp.sum(out, axis=-1), 1.0, atol=1e-3), "rows not normalized"

    print("KERNEL_OK")
</pallas_src>

<mosaic_0001>
module attributes {stable_mosaic.version = 11 : i64} {
  func.func @emg_mlp_kernel(%arg0: i32, %arg1: memref<4x36xf32, #tpu.memory_space<vmem>>, %arg2: memref<36x72xbf16, #tpu.memory_space<vmem>>, %arg3: memref<72x72xbf16, #tpu.memory_space<vmem>>, %arg4: memref<72x36xbf16, #tpu.memory_space<vmem>>, %arg5: memref<36x8xbf16, #tpu.memory_space<vmem>>, %arg6: memref<4x8xf32, #tpu.memory_space<vmem>>) attributes {dimension_semantics = [#tpu.dimension_semantics<parallel>], iteration_bounds = array<i64: 1>, scalar_prefetch = 0 : i64, scratch_operands = 0 : i64, tpu.core_type = #tpu.core_type<tc>, window_params = [{transform_indices = @transform_0, window_bounds = array<i64: 4, 36>}, {pipeline_mode = #tpu.pipeline_mode<synchronous>, transform_indices = @transform_1, window_bounds = array<i64: 36, 72>}, {pipeline_mode = #tpu.pipeline_mode<synchronous>, transform_indices = @transform_2, window_bounds = array<i64: 72, 72>}, {pipeline_mode = #tpu.pipeline_mode<synchronous>, transform_indices = @transform_3, window_bounds = array<i64: 72, 36>}, {pipeline_mode = #tpu.pipeline_mode<synchronous>, transform_indices = @transform_4, window_bounds = array<i64: 36, 8>}, {transform_indices = @transform_5, window_bounds = array<i64: 4, 8>}]} {
    %c0 = arith.constant 0 : index
    %c0_0 = arith.constant 0 : index
    %0 = vector.load %arg1[%c0, %c0_0] : memref<4x36xf32, #tpu.memory_space<vmem>>, vector<4x36xf32>
    %1 = arith.truncf %0 : vector<4x36xf32> to vector<4x36xbf16>
    %c0_1 = arith.constant 0 : index
    %c0_2 = arith.constant 0 : index
    %2 = vector.load %arg2[%c0_1, %c0_2] : memref<36x72xbf16, #tpu.memory_space<vmem>>, vector<36x72xbf16>
    %cst = arith.constant dense<0.000000e+00> : vector<4x72xf32>
    %3 = tpu.matmul %1, %2, %cst {dimension_numbers = #tpu.dot_dimension_numbers<[1], [0], [0], [1], [0, 0, 1, 1], [], []>} : vector<4x36xbf16>, vector<36x72xbf16>, vector<4x72xf32> -> vector<4x72xf32>
    %4 = math.tanh %3 : vector<4x72xf32>
    %5 = arith.truncf %4 : vector<4x72xf32> to vector<4x72xbf16>
    %c0_3 = arith.constant 0 : index
    %c0_4 = arith.constant 0 : index
    %6 = vector.load %arg3[%c0_3, %c0_4] : memref<72x72xbf16, #tpu.memory_space<vmem>>, vector<72x72xbf16>
    %cst_5 = arith.constant dense<0.000000e+00> : vector<4x72xf32>
    %7 = tpu.matmul %5, %6, %cst_5 {dimension_numbers = #tpu.dot_dimension_numbers<[1], [0], [0], [1], [0, 0, 1, 1], [], []>} : vector<4x72xbf16>, vector<72x72xbf16>, vector<4x72xf32> -> vector<4x72xf32>
    %8 = math.tanh %7 : vector<4x72xf32>
    %9 = arith.truncf %8 : vector<4x72xf32> to vector<4x72xbf16>
    %c0_6 = arith.constant 0 : index
    %c0_7 = arith.constant 0 : index
    %10 = vector.load %arg4[%c0_6, %c0_7] : memref<72x36xbf16, #tpu.memory_space<vmem>>, vector<72x36xbf16>
    %cst_8 = arith.constant dense<0.000000e+00> : vector<4x36xf32>
    %11 = tpu.matmul %9, %10, %cst_8 {dimension_numbers = #tpu.dot_dimension_numbers<[1], [0], [0], [1], [0, 0, 1, 1], [], []>} : vector<4x72xbf16>, vector<72x36xbf16>, vector<4x36xf32> -> vector<4x36xf32>
    %12 = math.tanh %11 : vector<4x36xf32>
    %13 = arith.truncf %12 : vector<4x36xf32> to vector<4x36xbf16>
    %c0_9 = arith.constant 0 : index
    %c0_10 = arith.constant 0 : index
    %14 = vector.load %arg5[%c0_9, %c0_10] : memref<36x8xbf16, #tpu.memory_space<vmem>>, vector<36x8xbf16>
    %cst_11 = arith.constant dense<0.000000e+00> : vector<4x8xf32>
    %15 = tpu.matmul %13, %14, %cst_11 {dimension_numbers = #tpu.dot_dimension_numbers<[1], [0], [0], [1], [0, 0, 1, 1], [], []>} : vector<4x36xbf16>, vector<36x8xbf16>, vector<4x8xf32> -> vector<4x8xf32>
    %cst_12 = arith.constant dense<0xFF800000> : vector<4xf32>
    %16 = vector.multi_reduction <maximumf>, %15, %cst_12 [1] : vector<4x8xf32> to vector<4xf32>
    %17 = vector.shape_cast %16 : vector<4xf32> to vector<4x1xf32>
    %18 = vector.broadcast %17 : vector<4x1xf32> to vector<4x8xf32>
    %19 = arith.subf %15, %18 : vector<4x8xf32>
    %20 = math.exp %19 : vector<4x8xf32>
    %cst_13 = arith.constant dense<0.000000e+00> : vector<4xf32>
    %21 = vector.multi_reduction <add>, %20, %cst_13 [1] : vector<4x8xf32> to vector<4xf32>
    %22 = vector.shape_cast %21 : vector<4xf32> to vector<4x1xf32>
    %23 = vector.broadcast %22 : vector<4x1xf32> to vector<4x8xf32>
    %24 = arith.divf %20, %23 : vector<4x8xf32>
    %c0_14 = arith.constant 0 : index
    %c0_15 = arith.constant 0 : index
    %25 = vector.load %arg6[%c0_14, %c0_15] : memref<4x8xf32, #tpu.memory_space<vmem>>, vector<4x8xf32>
    tpu.vector_store %arg6[%c0_14, %c0_15], %24 {strides = array<i32>} : memref<4x8xf32, #tpu.memory_space<vmem>>, vector<4x8xf32>,
    return
  }
  func.func @transform_0(%arg0: i32) -> (i32, i32) {
    %c0_i32 = arith.constant 0 : i32
    %c0_i32_0 = arith.constant 0 : i32
    return %arg0, %c0_i32 : i32, i32
  }
  func.func @transform_1(%arg0: i32) -> (i32, i32) {
    %c0_i32 = arith.constant 0 : i32
    %c0_i32_0 = arith.constant 0 : i32
    %c0_i32_1 = arith.constant 0 : i32
    return %c0_i32, %c0_i32_0 : i32, i32
  }
  func.func @transform_2(%arg0: i32) -> (i32, i32) {
    %c0_i32 = arith.constant 0 : i32
    %c0_i32_0 = arith.constant 0 : i32
    %c0_i32_1 = arith.constant 0 : i32
    return %c0_i32, %c0_i32_0 : i32, i32
  }
  func.func @transform_3(%arg0: i32) -> (i32, i32) {
    %c0_i32 = arith.constant 0 : i32
    %c0_i32_0 = arith.constant 0 : i32
    %c0_i32_1 = arith.constant 0 : i32
    return %c0_i32, %c0_i32_0 : i32, i32
  }
  func.func @transform_4(%arg0: i32) -> (i32, i32) {
    %c0_i32 = arith.constant 0 : i32
    %c0_i32_0 = arith.constant 0 : i32
    %c0_i32_1 = arith.constant 0 : i32
    return %c0_i32, %c0_i32_0 : i32, i32
  }
  func.func @transform_5(%arg0: i32) -> (i32, i32) {
    %c0_i32 = arith.constant 0 : i32
    %c0_i32_0 = arith.constant 0 : i32
    return %arg0, %c0_i32 : i32, i32
  }
}

</mosaic_0001>

<bundles_post_ra>
// kernel: tpu_custom_call.1
= control target key start
LH: loop header
LB: loop body
LE: loop exit
PB: predicated region body
PF: predicated region fallthrough
CT: control target
= control target key end

     0   :  { %v496_v1 = vmov 0.0   ;;  %vm48_vm0 = vcmask 1041408   ;;  %vm497_vm1 = vmmov 0   ;;  %vm134_vm2 = vcmask 1043456   ;;  %s616_s0 = inlined_call_operand.vmem [shape: f32[4,36], index: 0, kind: input, shape index: {}]   ;;  %s617_s1 = inlined_call_operand.vmem [shape: bf16[36,72], index: 1, kind: input, shape index: {}]   ;;  %s618_s2 = inlined_call_operand.vmem [shape: bf16[72,72], index: 2, kind: input, shape index: {}]   ;;  %s619_s3 = inlined_call_operand.vmem [shape: bf16[72,36], index: 3, kind: input, shape index: {}]   ;;  %s620_s4 = inlined_call_operand.vmem [shape: bf16[36,8], index: 4, kind: input, shape index: {}]   ;;  %s621_s5 = inlined_call_operand.hbm [shape: f32[4,8], index: 5, kind: output, shape index: {}]  }
   0x1   :  { %v448_v0 = vld [vmem:[%s617_s1 + $0x10] ss:$0 sps:$4 sm:$0x33]   ;;  %397 = vmatprep.subr.bf16.mxu0 %v496_v1  ;;  %407 = vmatprep.subr.bf16.mxu1 %v496_v1  ;;  %v450_v3 = vld [vmem:[%s617_s1 + $0x8] sm:$0xff]   ;;  %v22_v4 = vld [vmem:[%s616_s0] sm:$0xf] }
   0x2   :  { %v50_v2 = vsel %vm48_vm0, %v448_v0, 0  ;;  %403 = vmatprep.mubr.msk.bf16.mxu0 %vm497_vm1, %v496_v1  ;;  %v452_v5 = vld [vmem:[%s618_s2 + $0x20] ss:$0 sps:$4 sm:$0xff]   ;;  %417 = vmatprep.mubr.msk.bf16.mxu1 %vm497_vm1, %v496_v1  ;;  %vm44_vm3 = vcmask 293888   ;;  %v23_v10 = vpack.c.bf16 %v22_v4, %v22_v4 }
   0x3   :  { %398 = vmatpush3.bf16.msra.mxu0 %v50_v2  ;;  %v453_v6 = vld [vmem:[%s619_s3 + $0x20] ss:$0 sps:$4 sm:$0xff]   ;;  %v136_v8 = vsel %vm134_vm2, %v452_v5, 0 }
   0x4   :  { %399 = vmatprep.subr.bf16.mxu0 %v496_v1  ;;  %v451_v7 = vld [vmem:[%s617_s1] sm:$0xff]   ;;  %408 = vmatpush3.bf16.msra.mxu1 %v136_v8  ;;  %v220_v9 = vsel %vm134_vm2, %v453_v6, 0 }
   0x5   :  { %409 = vmatprep.subr.bf16.mxu1 %v496_v1 }
   0x7   :  { %400 = vmatpush3.bf16.msra.mxu0 %v450_v3 }
   0x8   :  { %401 = vmatprep.subr.bf16.mxu0 %v496_v1 }
   0xb   :  { %402 = vmatpush3.bf16.msra.mxu0 %v451_v7 }
   0xc   :  { %421 = vmatprep.subr.bf16.mxu0 %v496_v1 }
   0xd   :  { %10 = vsyncpa [#allocation3], 0  ;;  %v454_v11 = vld [vmem:[%s618_s2 + $0x18] sm:$0xff]   ;;  %v455_v12 = vld [vmem:[%s618_s2 + $0x10] sm:$0xff]   ;;  %vm130_vm4 = vcmask 588800   ;;  %vm330_vm5 = vcmask 60416  }
   0xe   :  { %404 = vmatmul.mubr.msk.bf16.vlgmr.msra.gmra.mxu0 %vm44_vm3, %v23_v10  ;;  %410 = vmatpush3.bf16.msra.mxu1 %v454_v11  ;;  %v456_v13 = vld [vmem:[%s618_s2 + $0x8] sm:$0xff]   ;;  %v457_v14 = vld [vmem:[%s618_s2] sm:$0xff]   ;;  %v449_v19 = vld [vmem:[%s620_s4 + $0x10] ss:$0 sps:$4 sm:$0x33]  }
   0xf   :  { %422 = vmatpush3.bf16.msra.mxu0 %v220_v9  ;;  %431 = vmatprep.mubr.msk.bf16.mxu0 %vm497_vm1, %v496_v1  ;;  %v288_v21 = vsel %vm48_vm0, %v449_v19, 0  ;;  %v458_v23 = vld [vmem:[%s619_s3 + $0x18] sm:$0xff]   ;;  %v459_v24 = vld [vmem:[%s619_s3 + $0x10] sm:$0xff]   ;;  %v460_v25 = vld [vmem:[%s619_s3 + $0x8] sm:$0xff]  }
  0x10   :  { %423 = vmatprep.subr.bf16.mxu0 %v496_v1  ;;  %411 = vmatprep.subr.bf16.mxu1 %v496_v1  ;;  %v461_v26 = vld [vmem:[%s619_s3] sm:$0xff]   ;;  %v462_v33 = vld [vmem:[%s620_s4 + $0x8] sm:$0xff]   ;;  %s498_s3 = smov [#allocation2]  }
  0x11   :  { %v463_v34 = vld [vmem:[%s620_s4] sm:$0xff]   ;;  %s349_s4 = sshll.u32 %s498_s3, 4  ;;  %s350_s4 = int_to_ptr.vmem [resolvable:$true] %s349_s4 }
  0x12   :  { %412 = vmatpush3.bf16.msra.mxu1 %v455_v12  ;;  %s474_s24 = scalar_lea.vmem %s350_s4, 64  ;;  %p479_p1 = scmp.lt.s32.totalorder %s350_s4, %s350_s4 }
  0x13   :  { %413 = vmatprep.subr.bf16.mxu1 %v496_v1  ;;  %424 = vmatpush3.bf16.msra.mxu0 %v458_v23  ;;  %p475_p0 = scmp.ne.s32.totalorder %s350_s4, %s474_s24  ;;  %p480_p2 = scmp.lt.s32.totalorder %s474_s24, %s474_s24 }
  0x14   :  { %425 = vmatprep.subr.bf16.mxu0 %v496_v1 }
  0x15   :  { %p481_p3 = por %p480_p2, %p479_p1 }
  0x16   :  { %414 = vmatpush3.bf16.msra.mxu1 %v456_v13 }
  0x17   :  { %415 = vmatprep.subr.bf16.mxu1 %v496_v1  ;;  %426 = vmatpush3.bf16.msra.mxu0 %v459_v24  ;;  %p482_p4 = pnand %p481_p3, %p475_p0 }
  0x18   :  { %427 = vmatprep.subr.bf16.mxu0 %v496_v1 }
  0x1a   :  { %416 = vmatpush3.bf16.msra.mxu1 %v457_v14 }
  0x1b   :  { %435 = vmatprep.subr.bf16.mxu1 %v496_v1  ;;  %428 = vmatpush3.bf16.msra.mxu0 %v460_v25 }
  0x1c   :  { %429 = vmatprep.subr.bf16.mxu0 %v496_v1 }
  0x1f   :  { %430 = vmatpush3.bf16.msra.mxu0 %v461_v26 }
  0xce   :  { %v86_v15 = vpop.f32.mrf.mxu0 }
  0xcf   :  { %464 = vtanh.f32 %v86_v15 }
  0xd0   :  { %v405_v16 = vpop.f32.mrf.mxu0 }
  0xd2   :  { %v89_v17 = vpop.f32.mrf.mxu0 }
  0xd4   :  { %v406_v18 = vpop.f32.mrf.mxu0 }
  0xdc   :  { %v465_v20 = vpop.eup %464 }
  0xdd   :  { %v93_v22 = vpack.c.bf16 %v465_v20, %v465_v20 }
  0xdf   :  { %418 = vmatmul.mubr.msk.bf16.vlgmr.msra.gmra.mxu1 %vm130_vm4, %v93_v22 }
  0xe0   :  { %436 = vmatpush3.bf16.msra.mxu1 %v288_v21  ;;  %441 = vmatprep.mubr.msk.bf16.mxu1 %vm497_vm1, %v496_v1 }
  0xe1   :  { %437 = vmatprep.subr.bf16.mxu1 %v496_v1 }
  0xe4   :  { %438 = vmatpush3.bf16.msra.mxu1 %v462_v33 }
  0xe5   :  { %439 = vmatprep.subr.bf16.mxu1 %v496_v1 }
  0xe8   :  { %440 = vmatpush3.bf16.msra.mxu1 %v463_v34 }
 0x19f   :  { %v172_v27 = vpop.f32.mrf.mxu1 }
 0x1a0   :  { %466 = vtanh.f32 %v172_v27 }
 0x1a1   :  { %v419_v28 = vpop.f32.mrf.mxu1 }
 0x1a3   :  { %v175_v29 = vpop.f32.mrf.mxu1 }
 0x1a5   :  { %v420_v30 = vpop.f32.mrf.mxu1 }
 0x1ad   :  { %v467_v31 = vpop.eup %466 }
 0x1ae   :  { %v179_v32 = vpack.c.bf16 %v467_v31, %v467_v31 }
 0x1b0   :  { %432 = vmatmul.mubr.msk.bf16.vlgmr.msra.gmra.mxu0 %vm130_vm4, %v179_v32 }
 0x270   :  { %v256_v35 = vpop.f32.mrf.mxu0 }
 0x271   :  { %468 = vtanh.f32 %v256_v35 }
 0x272   :  { %v433_v36 = vpop.f32.mrf.mxu0 }
 0x274   :  { %v259_v37 = vpop.f32.mrf.mxu0 }
 0x276   :  { %v434_v38 = vpop.f32.mrf.mxu0 }
 0x27e   :  { %v469_v39 = vpop.eup %468 }
 0x27f   :  { %v263_v40 = vpack.c.bf16 %v469_v39, %v469_v39 }
 0x281   :  { %442 = vmatmul.mubr.msk.bf16.vlgmr.msra.gmra.mxu1 %vm44_vm3, %v263_v40 }
 0x341   :  { %v324_v41 = vpop.f32.mrf.mxu1 }
 0x342   :  { %v331_v42 = vsel %vm330_vm5, %v324_v41, -inf }
 0x343   :  { %332 = vmax.xlane.f32.xlu0 %v331_v42  ;;  %v443_v43 = vpop.f32.mrf.mxu1 }
 0x345   :  { %v327_v44 = vpop.f32.mrf.mxu1 }
 0x347   :  { %v444_v45 = vpop.f32.mrf.mxu1 }
 0x3cc   :  { %v333_v46 = vpop.xlane.xlu0 %332 }
 0x3cd   :  { %v334_v47 = vsub.f32 %v324_v41, %v333_v46 }
 0x3cf   :  { %v335_v48 = vmul.f32 1.442695, %v334_v47 }
 0x3d1   :  { %470 = vpow2.f32 %v335_v48 }
 0x3de   :  { %v471_v49 = vpop.eup %470 }
 0x3df   :  { %v337_v50 = vsel %vm330_vm5, %v471_v49, 0.0 }
 0x3e0   :  { %338 = vadd.xlane.f32.xlu0 %v337_v50 }
 0x469   :  { %v339_v51 = vpop.xlane.xlu0 %338 }
 0x46a   :  { %472 = vrcp.f32 %v339_v51 }
 0x477   :  { %v473_v52 = vpop.eup %472 }
 0x478   :  { %v341_v53 = vmul.f32 %v473_v52, %v471_v49 }
 0x47a   :  { %342 = vst.msk [vmem:[#allocation2] sm:$0xf] %vm330_vm5, %v341_v53 }
 0x47b   :  { %485 = shalt.err (!%p482_p4)
}
 0x47c   :  { %352 = dma.vmem_to_hbm [thread:$0]  %s350_s4, 64, %s621_s5, [#allocation3]  }
 0x47d   :  { %494 = dma.done.wait [#allocation3], 64  }
 0x47e   :  { %495 = vsyncadd [#allocation3], 4294967232 }
 0x47f   :  { %356 = vsyncpa [#allocation3], 1 }

</bundles_post_ra>
